<compile_context>
chip_gen: v7x
topology: tpu7x:2x2x1
jax: 0.10.0
libtpu: 0.0.40
codegen_flags: <defaults>
</compile_context>

<pallas_src>
import functools

import jax
import jax.numpy as jnp
from jax.experimental import pallas as pl
from jax.experimental.pallas import tpu as pltpu


def _se_kernel(x_ref, w1t_ref, b1_ref, w2_ref, b2_ref, o_ref, *, inv_hw):
    """One grid step: a (bt, C, HW) slab.  C on sublanes, HW on lanes."""
    x = x_ref[...]                                               # (bt, C, HW)

    # Squeeze: per-channel spatial mean (lane reduction on the XLU), done as
    # sum * (1/HW) so no divide is issued.
    s = jnp.sum(x, axis=-1, keepdims=True) * inv_hw              # (bt, C, 1)

    # fc1 + ReLU on the VPU: h[b, j] = relu(sum_c w1t[c, j] * s[b, c] + b1[j])
    h = jnp.sum(w1t_ref[...][None, :, :] * s, axis=1, keepdims=True)
    h = jnp.maximum(h + b1_ref[...][None, :, :], 0.0)            # (bt, 1, Cr)

    # fc2 + sigmoid on the VPU: g[b, k] = sigmoid(sum_j w2[k, j] * h[b, j] + b2[k])
    g = jnp.sum(w2_ref[...][None, :, :] * h, axis=-1, keepdims=True)
    g = jax.nn.sigmoid(g + b2_ref[...][None, :, :])              # (bt, C, 1)

    # Excitation: gate broadcasts over the spatial lanes for free.
    o_ref[...] = x * g


def _pick_batch_block(batch, bytes_per_batch, target_bytes=4 << 20):
    """Largest divisor of `batch` whose slab fits `target_bytes`, preferring
    >= 2 grid steps so the input/output DMA pipeline can double-buffer."""
    divisors = [d for d in range(1, batch + 1) if batch % d == 0]
    fitting = [d for d in divisors if d * bytes_per_batch <= target_bytes] or [1]
    pipelined = [d for d in fitting if batch // d >= 2]
    return max(pipelined) if pipelined else max(fitting)


def channel_se_layer(x, fc1_w, fc1_b, fc2_w, fc2_b):
    """SE forward.  x: (B, C, H, W) f32.
    fc1_w: (Cr, C), fc1_b: (Cr,), fc2_w: (C, Cr), fc2_b: (C,)  (torch nn.Linear layout)."""
    B, C, H, W = x.shape
    Cr = fc1_w.shape[0]
    HW = H * W

    # Free, contiguous reshape: spatial axis becomes the lane axis.
    x3 = x.reshape(B, C, HW)

    # Weight layouts chosen so C stays on sublanes / Cr on lanes in-kernel.
    w1t = fc1_w.T                       # (C, Cr)
    b1 = fc1_b.reshape(1, Cr)           # (1, Cr)
    w2 = fc2_w                          # (C, Cr)
    b2 = fc2_b.reshape(C, 1)            # (C, 1)

    bt = _pick_batch_block(B, C * HW * x.dtype.itemsize)
    grid = (B // bt,)

    kernel = functools.partial(_se_kernel, inv_hw=1.0 / HW)

    cost = pl.CostEstimate(
        flops=int(B * (2 * C * HW + 4 * C * Cr)),
        transcendentals=int(B * C),
        bytes_accessed=int(2 * B * C * HW * 4 + (2 * C * Cr + C + Cr) * 4),
    )

    out3 = pl.pallas_call(
        kernel,
        out_shape=jax.ShapeDtypeStruct((B, C, HW), x.dtype),
        grid=grid,
        in_specs=[
            pl.BlockSpec((bt, C, HW), lambda b: (b, 0, 0)),
            pl.BlockSpec((C, Cr), lambda b: (0, 0)),
            pl.BlockSpec((1, Cr), lambda b: (0, 0)),
            pl.BlockSpec((C, Cr), lambda b: (0, 0)),
            pl.BlockSpec((C, 1), lambda b: (0, 0)),
        ],
        out_specs=pl.BlockSpec((bt, C, HW), lambda b: (b, 0, 0)),
        compiler_params=pltpu.CompilerParams(
            dimension_semantics=("parallel",),   # shard batch across v7x's 2 TCs
            vmem_limit_bytes=32 << 20,           # safe on v5e/v6e/v7x
        ),
        cost_estimate=cost,
    )(x3, w1t, b1, w2, b2)

    return out3.reshape(B, C, H, W)


def _reference(x, fc1_w, fc1_b, fc2_w, fc2_b):
    # Pure-JAX reference mirroring the PyTorch forward (torch weight layout).
    B, C, H, W = x.shape
    squeeze = x.reshape(B, C, -1).mean(axis=2)
    h = jax.nn.relu(squeeze @ fc1_w.T + fc1_b)
    g = jax.nn.sigmoid(h @ fc2_w.T + fc2_b)
    return x * g[:, :, None, None]


if __name__ == "__main__":
    # Module config: num_channels=4, reduction_ratio=2 -> reduced=2
    B, C, H, W = 2, 4, 16, 16
    reduction_ratio = 2
    Cr = C // reduction_ratio

    key = jax.random.PRNGKey(0)
    kx, k1, k2, k3, k4 = jax.random.split(key, 5)

    x = jax.random.normal(kx, (B, C, H, W), dtype=jnp.float32)

    # Deterministic parameters in torch nn.Linear layout.
    fc1_w = jax.random.normal(k1, (Cr, C), dtype=jnp.float32) * 0.5
    fc1_b = jax.random.normal(k2, (Cr,), dtype=jnp.float32) * 0.1
    fc2_w = jax.random.normal(k3, (C, Cr), dtype=jnp.float32) * 0.5
    fc2_b = jax.random.normal(k4, (C,), dtype=jnp.float32) * 0.1

    out = channel_se_layer(x, fc1_w, fc1_b, fc2_w, fc2_b)
    jax.block_until_ready(out)

    ref = _reference(x, fc1_w, fc1_b, fc2_w, fc2_b)
    assert out.shape == (B, C, H, W)
    assert jnp.allclose(out, ref, atol=1e-5, rtol=1e-5), "mismatch vs reference"

    print("KERNEL_OK")
</pallas_src>

<mosaic_0001>
module attributes {stable_mosaic.version = 11 : i64} {
  func.func @_se_kernel(%arg0: i32, %arg1: memref<1x4x256xf32, #tpu.memory_space<vmem>>, %arg2: memref<4x2xf32, #tpu.memory_space<vmem>>, %arg3: memref<1x2xf32, #tpu.memory_space<vmem>>, %arg4: memref<4x2xf32, #tpu.memory_space<vmem>>, %arg5: memref<4x1xf32, #tpu.memory_space<vmem>>, %arg6: memref<1x4x256xf32, #tpu.memory_space<vmem>>) attributes {dimension_semantics = [#tpu.dimension_semantics<parallel>], iteration_bounds = array<i64: 2>, scalar_prefetch = 0 : i64, scratch_operands = 0 : i64, tpu.core_type = #tpu.core_type<tc>, window_params = [{transform_indices = @transform_0, window_bounds = array<i64: 1, 4, 256>}, {pipeline_mode = #tpu.pipeline_mode<synchronous>, transform_indices = @transform_1, window_bounds = array<i64: 4, 2>}, {pipeline_mode = #tpu.pipeline_mode<synchronous>, transform_indices = @transform_2, window_bounds = array<i64: 1, 2>}, {pipeline_mode = #tpu.pipeline_mode<synchronous>, transform_indices = @transform_3, window_bounds = array<i64: 4, 2>}, {pipeline_mode = #tpu.pipeline_mode<synchronous>, transform_indices = @transform_4, window_bounds = array<i64: 4, 1>}, {transform_indices = @transform_5, window_bounds = array<i64: 1, 4, 256>}]} {
    %c0 = arith.constant 0 : index
    %c0_0 = arith.constant 0 : index
    %c0_1 = arith.constant 0 : index
    %0 = vector.load %arg1[%c0, %c0_0, %c0_1] : memref<1x4x256xf32, #tpu.memory_space<vmem>>, vector<1x4x256xf32>
    %cst = arith.constant dense<0.000000e+00> : vector<1x4xf32>
    %1 = vector.multi_reduction <add>, %0, %cst [2] : vector<1x4x256xf32> to vector<1x4xf32>
    %2 = vector.shape_cast %1 : vector<1x4xf32> to vector<1x4x1xf32>
    %cst_2 = arith.constant 3.906250e-03 : f32
    %3 = vector.broadcast %cst_2 : f32 to vector<1x4x1xf32>
    %4 = arith.mulf %2, %3 : vector<1x4x1xf32>
    %c0_3 = arith.constant 0 : index
    %c0_4 = arith.constant 0 : index
    %5 = vector.load %arg2[%c0_3, %c0_4] : memref<4x2xf32, #tpu.memory_space<vmem>>, vector<4x2xf32>
    %6 = vector.shape_cast %5 : vector<4x2xf32> to vector<1x4x2xf32>
    %7 = vector.broadcast %4 : vector<1x4x1xf32> to vector<1x4x2xf32>
    %8 = arith.mulf %6, %7 : vector<1x4x2xf32>
    %cst_5 = arith.constant dense<0.000000e+00> : vector<1x2xf32>
    %9 = vector.multi_reduction <add>, %8, %cst_5 [1] : vector<1x4x2xf32> to vector<1x2xf32>
    %10 = vector.shape_cast %9 : vector<1x2xf32> to vector<1x1x2xf32>
    %c0_6 = arith.constant 0 : index
    %c0_7 = arith.constant 0 : index
    %11 = vector.load %arg3[%c0_6, %c0_7] : memref<1x2xf32, #tpu.memory_space<vmem>>, vector<1x2xf32>
    %12 = vector.shape_cast %11 : vector<1x2xf32> to vector<1x1x2xf32>
    %13 = arith.addf %10, %12 : vector<1x1x2xf32>
    %cst_8 = arith.constant 0.000000e+00 : f32
    %14 = vector.broadcast %cst_8 : f32 to vector<1x1x2xf32>
    %15 = arith.maximumf %13, %14 : vector<1x1x2xf32>
    %c0_9 = arith.constant 0 : index
    %c0_10 = arith.constant 0 : index
    %16 = vector.load %arg4[%c0_9, %c0_10] : memref<4x2xf32, #tpu.memory_space<vmem>>, vector<4x2xf32>
    %17 = vector.shape_cast %16 : vector<4x2xf32> to vector<1x4x2xf32>
    %18 = vector.broadcast %15 : vector<1x1x2xf32> to vector<1x4x2xf32>
    %19 = arith.mulf %17, %18 : vector<1x4x2xf32>
    %cst_11 = arith.constant dense<0.000000e+00> : vector<1x4xf32>
    %20 = vector.multi_reduction <add>, %19, %cst_11 [2] : vector<1x4x2xf32> to vector<1x4xf32>
    %21 = vector.shape_cast %20 : vector<1x4xf32> to vector<1x4x1xf32>
    %c0_12 = arith.constant 0 : index
    %c0_13 = arith.constant 0 : index
    %22 = vector.load %arg5[%c0_12, %c0_13] : memref<4x1xf32, #tpu.memory_space<vmem>>, vector<4x1xf32>
    %23 = vector.shape_cast %22 : vector<4x1xf32> to vector<1x4x1xf32>
    %24 = arith.addf %21, %23 : vector<1x4x1xf32>
    %25 = arith.negf %24 : vector<1x4x1xf32>
    %26 = math.exp %25 : vector<1x4x1xf32>
    %cst_14 = arith.constant 1.000000e+00 : f32
    %27 = vector.broadcast %cst_14 : f32 to vector<1x4x1xf32>
    %28 = arith.addf %27, %26 : vector<1x4x1xf32>
    %29 = arith.divf %27, %28 : vector<1x4x1xf32>
    %30 = vector.broadcast %29 : vector<1x4x1xf32> to vector<1x4x256xf32>
    %31 = arith.mulf %0, %30 : vector<1x4x256xf32>
    %c0_15 = arith.constant 0 : index
    %c0_16 = arith.constant 0 : index
    %c0_17 = arith.constant 0 : index
    %32 = vector.load %arg6[%c0_15, %c0_16, %c0_17] : memref<1x4x256xf32, #tpu.memory_space<vmem>>, vector<1x4x256xf32>
    tpu.vector_store %arg6[%c0_15, %c0_16, %c0_17], %31 {strides = array<i32>} : memref<1x4x256xf32, #tpu.memory_space<vmem>>, vector<1x4x256xf32>,
    return
  }
  func.func @transform_0(%arg0: i32) -> (i32, i32, i32) {
    %c0_i32 = arith.constant 0 : i32
    %c0_i32_0 = arith.constant 0 : i32
    %c0_i32_1 = arith.constant 0 : i32
    return %arg0, %c0_i32, %c0_i32_0 : i32, i32, i32
  }
  func.func @transform_1(%arg0: i32) -> (i32, i32) {
    %c0_i32 = arith.constant 0 : i32
    %c0_i32_0 = arith.constant 0 : i32
    %c0_i32_1 = arith.constant 0 : i32
    return %c0_i32, %c0_i32_0 : i32, i32
  }
  func.func @transform_2(%arg0: i32) -> (i32, i32) {
    %c0_i32 = arith.constant 0 : i32
    %c0_i32_0 = arith.constant 0 : i32
    %c0_i32_1 = arith.constant 0 : i32
    return %c0_i32, %c0_i32_0 : i32, i32
  }
  func.func @transform_3(%arg0: i32) -> (i32, i32) {
    %c0_i32 = arith.constant 0 : i32
    %c0_i32_0 = arith.constant 0 : i32
    %c0_i32_1 = arith.constant 0 : i32
    return %c0_i32, %c0_i32_0 : i32, i32
  }
  func.func @transform_4(%arg0: i32) -> (i32, i32) {
    %c0_i32 = arith.constant 0 : i32
    %c0_i32_0 = arith.constant 0 : i32
    %c0_i32_1 = arith.constant 0 : i32
    return %c0_i32, %c0_i32_0 : i32, i32
  }
  func.func @transform_5(%arg0: i32) -> (i32, i32, i32) {
    %c0_i32 = arith.constant 0 : i32
    %c0_i32_0 = arith.constant 0 : i32
    %c0_i32_1 = arith.constant 0 : i32
    return %arg0, %c0_i32, %c0_i32_0 : i32, i32, i32
  }
}

</mosaic_0001>

<bundles_post_ra>
// kernel: tpu_custom_call.1
= control target key start
LH: loop header
LB: loop body
LE: loop exit
PB: predicated region body
PF: predicated region fallthrough
CT: control target
= control target key end

     0   :  { %10 = vsyncpa [#allocation3], 0  ;;  %s626_s0 = inlined_call_operand.vmem [shape: f32[2,4,256], index: 0, kind: input, shape index: {}]   ;;  %s627_s1 = inlined_call_operand.vmem [shape: f32[4,2], index: 1, kind: input, shape index: {}]   ;;  %s628_s2 = inlined_call_operand.vmem [shape: f32[1,2], index: 2, kind: input, shape index: {}]   ;;  %s629_s3 = inlined_call_operand.vmem [shape: f32[4,2], index: 3, kind: input, shape index: {}]   ;;  %s630_s4 = inlined_call_operand.vmem [shape: f32[4,1], index: 4, kind: input, shape index: {}]   ;;  %s631_s5 = inlined_call_operand.hbm [shape: f32[2,4,256], index: 5, kind: output, shape index: {}]  }
   0x1   :  { %12 = vsyncpa [#allocation3 + $0x1], 0  ;;  %s512_s18 = smov 0   ;;  %s514_s19 = smov 0  }
   0x2   :  { %s516_s20 = smov 0   ;;  %s518_s21 = smov 0  }
   0x3 LB: > { %s533_s22 = sadd.s32 4294967295, %s477_s21   ;;  %s352_s23 = sadd.s32 4294967294, %s477_s21   ;;  %s477_s21 = sphi %s518_s21, %s637_s21   ;;  %s473_s20 = sphi %s516_s20, %s636_s20   ;;  %s469_s19 = sphi %s514_s19, %s635_s19   ;;  %s465_s18 = sphi %s512_s18, %s634_s18  }
   0x4   : > { %s537_s24 = sadd.s32 1, %s477_s21   ;;  %s135_s25 = sadd.s32 1, %s473_s20 }
   0x5   : > { %s132_s26 = ssub.s32 %s477_s21, %s537_s24  ;;  %p145_p0 = scmp.ne.s32.totalorder %s473_s20, %s469_s19 }
   0x6   : > { %p133_p1 = scmp.eq.s32.totalorder %s132_s26, 0  ;;  %p146_p2 = scmp.eq.s32.totalorder %s533_s22, 1 }
   0x7   : > { %p151_p3 = scmp.ne.s32.totalorder %s469_s19, %s465_s18  ;;  %p152_p4 = scmp.eq.s32.totalorder %s352_s23, 1 }
   0x8   : > { %s548_s27 = scalar_select %p133_p1, %s473_s20, %s135_s25  }
   0x9   : > { %p550_p5 = por %p146_p2, %p145_p0  ;;  %p554_p6 = por %p152_p4, %p151_p3 }
   0xa   : > { %p355_p7 = scmp.ge.s32.totalorder %s477_s21, 1  ;;  %p190_p8 = scmp.lt.s32.totalorder %s477_s21, 3 }
   0xc   : > { %p191_p9 = pnand %p355_p7, %p190_p8 }
   0xd   : > { %p218_p10 = scmp.lt.s32.totalorder (!%p191_p9), %s533_s22, 1  ;;  %vm227_vm0 = vcmask (!%p191_p9), 1043456   ;;  %v234_v5 = vld [vmem:[%s627_s1] sm:$0xf] (!%p191_p9)  ;;  %vm236_vm1 = vcmask (!%p191_p9), 11264   ;;  %v248_v13 = vlaneseq (!%p191_p9)  ;;  %v479_v26 = vmov (!%p191_p9), 0  }
   0xe   : > { %194 = sbr.rel (%p191_p9) target bundleno = 515 (0x203), region = 40  ;;  %v244_v17 = vld [vmem:[%s628_s2] sm:$0x1] (!%p191_p9)  ;;  %408 = vset.pattern.permute.xlu1 (!%p191_p9), %v479_v26  ;;  %409 = vset.pattern.permute.xlu0 (!%p191_p9), %v479_v26  ;;  %v480_v34 = vmov (!%p191_p9), 839922192   ;;  %s215_s23 = sand.u32 (!%p191_p9), 1, %s469_s19  }
   0xf   : > { %v249_v16 = vshrl.u32 (!%p191_p9), %v248_v13, 7  ;;  %v247_v22 = vld [vmem:[%s629_s3] sm:$0xf] (!%p191_p9)  ;;  %v269_v35 = vunpack.c.l.s4 (!%p191_p9), %v480_v34  ;;  %s356_s25 = sshll.u32 (!%p191_p9), %s215_s23, 3  ;;  %s366_s26 = sshll.u32 (!%p191_p9), %s533_s22, 7 }
  0x10   : > { %v256_v27 = vld [vmem:[%s630_s4] sm:$0xf] (!%p191_p9)  ;;  %s279_s10 = scalar_lea.sflag (!%p191_p9), [#allocation3], %s215_s23 }
  0x11   : > { %v250_v20 = vsub.s32 (!%p191_p9), 0, %v249_v16  ;;  %v270_v36 = vunpack.c.0.s8 (!%p191_p9), %v269_v35 }
  0x13   : > { %v273_v37 = vsub.s32 (!%p191_p9), %v270_v36, %v249_v16 }
  0x15   : > { %s219_s30 = scalar_select %p218_p10, %s533_s22, 1 }
  0x16   : > { %s481_s22 = smov [#allocation2]  }
  0x17   : > { %s365_s6 = sshll.u32 %s219_s30, 3  ;;  %s217_s30 = scalar_lea.vmem [#allocation2], %s356_s25 }
  0x18   : > { %s222_s9 = scalar_lea.vmem %s626_s0, %s365_s6  ;;  %s293_s6 = sshll.u32 %s217_s30, 4  ;;  %s586_s6 = int_to_ptr.vmem [resolvable:$true] %s293_s6 }
  0x19   : > { %v223_v0 = vld [vmem:[%s222_s9] sm:$0xff]  ;;  %s584_s9 = scalar_lea.hbm %s631_s5, %s366_s26  ;;  %s415_s11 = scalar_lea.vmem %s586_s6, 128 }
  0x1a   : > { %v225_v1 = vcombine.high %v223_v0, %v223_v0  ;;  %v228_v2 = vsel %vm227_vm0, %v223_v0, 0.0  ;;  %p416_p11 = scmp.ne.s32.totalorder %s586_s6, %s415_s11  ;;  %s419_s12 = sshll.u32 %s481_s22, 4  ;;  %s420_s12 = int_to_ptr.vmem [resolvable:$false] %s419_s12 }
  0x1b   : > { %s421_s13 = scalar_lea.vmem %s420_s12, 256  ;;  %p422_p0 = scmp.lt.s32.totalorder %s586_s6, %s420_s12 }
  0x1c   : > { %v229_v3 = vsel %vm227_vm0, %v225_v1, 0.0  ;;  %p417_p12 = pnand %p416_p11, %p550_p5  ;;  %p423_p1 = scmp.lt.s32.totalorder %s421_s13, %s415_s11 }
  0x1d   : > { %v230_v4 = vadd.f32 %v229_v3, %v228_v2 }
  0x1e   : > { %p418_p13 = pneg %p417_p12  ;;  %p424_p2 = por %p423_p1, %p422_p0 }
  0x1f   : > { %231 = vadd.xlane.f32.xlu0 %v230_v4 }
  0x20   : > { %p425_p3 = pnand %p424_p2, %p418_p13 }
  0xac   : > { %v232_v6 = vpop.xlane.xlu0 %231 }
  0xad   : > { %v233_v7 = vmul.f32 0.00390625, %v232_v6 }
  0xaf   : > { %v235_v8 = vmul.f32 %v234_v5, %v233_v7 }
  0xb1   : > { %v237_v9 = vsel %vm236_vm1, %v235_v8, 0.0 }
  0xb2   : > { %v238_v10 = vrot.slane %v237_v9, 4 }
  0xb4   : > { %v239_v11 = vadd.f32 %v238_v10, %v237_v9 }
  0xb6   : > { %v240_v12 = vrot.slane %v239_v11, 2 }
  0xb8   : > { %v241_v14 = vadd.f32 %v240_v12, %v239_v11 }
  0xba   : > { %v242_v15 = vrot.slane %v241_v14, 1 }
  0xbc   : > { %v243_v18 = vadd.f32 %v242_v15, %v241_v14 }
  0xbe   : > { %v245_v19 = vadd.f32 %v244_v17, %v243_v18 }
  0xc0   : > { %v246_v21 = vmax.f32 %v245_v19, 0.0 }
  0xc2   : > { %v251_v23 = vrot.slane %v246_v21, %v250_v20 }
  0xc4   : > { %v252_v24 = vmul.f32 %v251_v23, %v247_v22 }
  0xc6   : > { %v253_v25 = vsel %vm236_vm1, %v252_v24, 0.0 }
  0xc7   : > { %254 = vadd.xlane.f32.xlu0 %v253_v25 }
 0x154   : > { %v255_v28 = vpop.xlane.xlu0 %254 }
 0x155   : > { %v257_v29 = vadd.f32 %v256_v27, %v255_v28 }
 0x157   : > { %v359_v30 = vmul.f32 -1.442695, %v257_v29 }
 0x159   : > { %411 = vpow2.f32 %v359_v30 }
 0x163   : > { %v412_v31 = vpop.eup %411 }
 0x164   : > { %v261_v32 = vadd.f32 1.0, %v412_v31 }
 0x166   : > { %413 = vrcp.f32 %v261_v32 }
 0x170   : > { %v414_v33 = vpop.eup %413 }
 0x171   : > { %266 = vperm.xlu1 %408, %v414_v33  }
 0x1f0   : > { %v267_v38 = vpop.permute.xlu1 %266 }
 0x1f1   : > { %v274_v39 = vrot.slane %v267_v38, %v273_v37 }
 0x1f3   : > { %v276_v40 = vmul.f32 %v274_v39, %v223_v0 }
 0x1f5   : > { %277 = vst [vmem:[%s217_s30] sm:$0xff] %v276_v40 }
 0x1f6   : > { %428 = shalt.err (!%p425_p3)
}
 0x1f7   : > { %s429_s14 = scalar_lea.hbm %s584_s9, 128  ;;  %s433_s17 = scalar_lea.hbm %s631_s5, 256 }
 0x1f8   : > { %p430_p4 = scmp.ne.s32.totalorder %s584_s9, %s429_s14  ;;  %p434_p9 = scmp.lt.u32.totalorder %s584_s9, %s631_s5 }
 0x1f9   : > { %p435_p10 = scmp.lt.u32.totalorder %s433_s17, %s429_s14  ;;  %p437_p12 = scmp.lt.u32.totalorder %s429_s14, %s584_s9 }
 0x1fa   : > { %p431_p7 = pnand %p430_p4, %p550_p5 }
 0x1fb   : > { %p436_p11 = por %p435_p10, %p434_p9 }
 0x1fc   : > { %p432_p8 = pneg %p431_p7 }
 0x1fd   : > { %p438_p13 = por %p437_p12, %p436_p11 }
 0x1ff   : > { %p439_p0 = pnand %p438_p13, %p432_p8 }
 0x201   : > { %442 = shalt.err (!%p439_p0)
}
 0x202   : > { %367 = dma.vmem_to_hbm [thread:$0]  (%p550_p5), %s586_s6, 128, %s584_s9, %s279_s10  }
 0x203 PF: > { %p373_p1 = scmp.ge.s32.totalorder %s477_s21, 2  ;;  %s305_s26 = sand.u32 1, %s465_s18  }
 0x204   : > { %s306_s30 = scalar_lea.sflag [#allocation3], %s305_s26 }
 0x205   : > { %p370_p2 = pnand %p373_p1, %p554_p6 }
 0x207   : > { %460 = dma.done.wait (!%p370_p2), %s306_s30, 128  }
 0x208   : > { %462 = vsyncadd (!%p370_p2), %s306_s30, 4294967168  ;;  %p15_p3 = scmp.ge.s32.totalorder %s537_s24, 4   ;;  %s634_s18 = smov %s469_s19 }
 0x209   : > { %s635_s19 = smov %s473_s20  ;;  %s636_s20 = smov %s548_s27 }
 0x20a   : > { %s637_s21 = smov %s537_s24  ;;  %17 = sbr.rel (!%p15_p3) target bundleno = 3 (0x3), region = 75 }
 0x211   :  { %311 = vsyncpa [#allocation3], 1 }
 0x212   :  { %313 = vsyncpa [#allocation3 + $0x1], 1 }

</bundles_post_ra>
